<compile_context>
chip_gen: v5e
topology: v5e:2x2
jax: 0.10.0
libtpu: 0.0.40
codegen_flags: <defaults>
</compile_context>

<pallas_src>
import functools
import math

import jax
import jax.numpy as jnp
from jax import lax
from jax.experimental import pallas as pl
from jax.experimental.pallas import tpu as pltpu

_SUB = 8
_LANES = 128
_CHUNK = _SUB * _LANES      # 1024 cells per inner-loop chunk


def _yolo_loss_kernel(pred_ref, targ_ref, out_ref, *, S, B, C,
                      lambda_coord, lambda_noobj, chunks_per_tile):
    """One grid step: YOLOv1 loss of chunks_per_tile*1024 cells -> (8,128) partial.

    pred_ref / targ_ref: (chunks_per_tile, N, 8, 128) -- feature-major, cells
    dense on (sublane, lane).  out_ref: (1, 8, 128) per-tile partial sums.
    """
    i = pl.program_id(0)
    fS = float(S)
    inv_S = 1.0 / fS

    r_iota = lax.broadcasted_iota(jnp.int32, (_SUB, _LANES), 0)
    l_iota = lax.broadcasted_iota(jnp.int32, (_SUB, _LANES), 1)

    def chunk_loss(c):
        # Per-feature (8,128) loads straight from VMEM keep register pressure low.
        def pf(f):
            return pred_ref[c, f].astype(jnp.float32)

        def tf(f):
            return targ_ref[c, f].astype(jnp.float32)

        # ---- grid offsets from the flat cell index (no DMA'd grid tensor) ---
        # flat cell = ((batch*S + row)*S + col):  gx = cell % S, gy = (cell//S) % S
        cell = (i * chunks_per_tile + c) * _CHUNK + r_iota * _LANES + l_iota
        cell_f = cell.astype(jnp.float32)          # exact: cell count << 2^23
        q1 = jnp.floor(cell_f / fS)                # cell // S
        gx = cell_f - fS * q1                      # cell %  S   (column)
        q2 = jnp.floor(q1 / fS)
        gy = q1 - fS * q2                          # (cell // S) % S  (row)

        # ---- masks -----------------------------------------------------------
        tconf = tf(4)
        obj = tconf == 1.0
        noobj = tconf < 1.0

        # ---- GT box (first target box): txty -> absolute center + corners ----
        t_tx, t_ty = tf(0), tf(1)
        gt_w, gt_h = tf(2), tf(3)
        gt_x = (t_tx + gx) * inv_S
        gt_y = (t_ty + gy) * inv_S
        gt_x1 = gt_x - 0.5 * gt_w
        gt_x2 = gt_x + 0.5 * gt_w
        gt_y1 = gt_y - 0.5 * gt_h
        gt_y2 = gt_y + 0.5 * gt_h
        gt_area = gt_w * gt_h

        # ---- IoU of GT vs each of the B predicted boxes (static unroll) ------
        ious, confs, pxs, pys, pws, phs = [], [], [], [], [], []
        for b in range(B):
            p_tx, p_ty = pf(5 * b + 0), pf(5 * b + 1)
            pw, ph = pf(5 * b + 2), pf(5 * b + 3)
            px = (p_tx + gx) * inv_S
            py = (p_ty + gy) * inv_S
            iw = jnp.maximum(jnp.minimum(gt_x2, px + 0.5 * pw) -
                             jnp.maximum(gt_x1, px - 0.5 * pw), 0.0)
            ih = jnp.maximum(jnp.minimum(gt_y2, py + 0.5 * ph) -
                             jnp.maximum(gt_y1, py - 0.5 * ph), 0.0)
            inter = iw * ih
            union = jnp.maximum(gt_area + pw * ph - inter, 1e-10)
            # EUP approx reciprocal + one Newton step: keeps the divide off the
            # saturated VALU while staying ~f32 accurate (no argmax tie flips).
            r = pl.reciprocal(union, approx=True)
            r = r * (2.0 - union * r)
            ious.append(inter * r)
            confs.append(pf(5 * b + 4))
            pxs.append(p_tx)
            pys.append(p_ty)
            pws.append(pw)
            phs.append(ph)

        # ---- responsible-box selection (first-max ties, like torch.max) ------
        best_iou = ious[0]
        sel = [jnp.ones_like(best_iou)] + [None] * (B - 1)
        for b in range(1, B):
            better = ious[b] > best_iou
            best_iou = jnp.where(better, ious[b], best_iou)
            betf = better.astype(jnp.float32)
            keep = 1.0 - betf
            for j in range(b):
                sel[j] = sel[j] * keep
            sel[b] = betf

        resp_x = sel[0] * pxs[0]
        resp_y = sel[0] * pys[0]
        resp_w = sel[0] * pws[0]
        resp_h = sel[0] * phs[0]
        resp_c = sel[0] * confs[0]
        all_conf_sq = confs[0] * confs[0]
        for b in range(1, B):
            resp_x += sel[b] * pxs[b]
            resp_y += sel[b] * pys[b]
            resp_w += sel[b] * pws[b]
            resp_h += sel[b] * phs[b]
            resp_c += sel[b] * confs[b]
            all_conf_sq += confs[b] * confs[b]
        # sel is an exclusive one-hot -> sum_b sel_b*conf_b^2 == resp_c^2.
        nega_obj_sq = all_conf_sq - resp_c * resp_c

        # ---- per-cell loss terms ---------------------------------------------
        dx = jnp.clip(resp_x, 0.0, 1.0) - t_tx
        dy = jnp.clip(resp_y, 0.0, 1.0) - t_ty
        dw = (jnp.sqrt(jnp.maximum(resp_w, 0.0)) -
              jnp.sqrt(jnp.maximum(gt_w, 0.0)))
        dh = (jnp.sqrt(jnp.maximum(resp_h, 0.0)) -
              jnp.sqrt(jnp.maximum(gt_h, 0.0)))
        dcf = resp_c - best_iou
        loss_class = jnp.zeros_like(best_iou)
        for k in range(C):
            d = pf(5 * B + k) - tf(5 * B + k)
            loss_class += d * d

        obj_terms = (lambda_coord * (dx * dx + dy * dy + dw * dw + dh * dh)
                     + dcf * dcf + loss_class + lambda_noobj * nega_obj_sq)
        return (jnp.where(obj, obj_terms, 0.0)
                + jnp.where(noobj, lambda_noobj * all_conf_sq, 0.0))

    def body(c, acc):
        return acc + chunk_loss(c)

    out_ref[0] = lax.fori_loop(0, chunks_per_tile, body,
                               jnp.zeros((_SUB, _LANES), jnp.float32))


def yolo_v1_loss(pred, target, *, class_num, lambda_coord=5.0, lambda_noobj=0.5,
                 max_cells_per_tile=16384):
    """pred/target: [batch, S, S, 5*B + C], same semantics as Loss.forward."""
    assert pred.shape == target.shape
    batch, S, S2, N = pred.shape
    assert S == S2
    B = (N - class_num) // 5
    assert 5 * B + class_num == N
    M = batch * S * S

    # Cells packed dense on (sublane, lane): 1024-cell chunks, several per tile.
    n_chunks = -(-M // _CHUNK)
    chunks_per_tile = max(1, min(max_cells_per_tile // _CHUNK, n_chunks))
    n_tiles = -(-n_chunks // chunks_per_tile)
    n_chunks_total = n_tiles * chunks_per_tile
    M_pad = n_chunks_total * _CHUNK
    assert M_pad < (1 << 23), "in-kernel f32 cell-index math requires < 2^23 cells"

    def pack(x):
        # [batch,S,S,N] -> (n_chunks_total, N, 8, 128); one fused XLA pad +
        # layout copy of a small tensor.  Padded cells have pred == target == 0
        # (no-obj, zero conf) -> exactly zero loss contribution.
        x = x.reshape(M, N)
        if M_pad != M:
            x = jnp.pad(x, ((0, M_pad - M), (0, 0)))
        return x.reshape(n_chunks_total, _SUB, _LANES, N).transpose(0, 3, 1, 2)

    predP = pack(pred)        # input dtype preserved; f32 upcast happens in-kernel
    targP = pack(target)

    kernel = functools.partial(
        _yolo_loss_kernel, S=S, B=B, C=class_num,
        lambda_coord=lambda_coord, lambda_noobj=lambda_noobj,
        chunks_per_tile=chunks_per_tile)

    partials = pl.pallas_call(
        kernel,
        out_shape=jax.ShapeDtypeStruct((n_tiles, _SUB, _LANES), jnp.float32),
        grid_spec=pltpu.PrefetchScalarGridSpec(
            num_scalar_prefetch=0,
            grid=(n_tiles,),
            in_specs=[
                pl.BlockSpec((chunks_per_tile, N, _SUB, _LANES),
                             lambda i: (i, 0, 0, 0)),
                pl.BlockSpec((chunks_per_tile, N, _SUB, _LANES),
                             lambda i: (i, 0, 0, 0)),
            ],
            out_specs=pl.BlockSpec((1, _SUB, _LANES), lambda i: (i, 0, 0)),
        ),
        compiler_params=pltpu.CompilerParams(
            dimension_semantics=("parallel",)),
    )(predP, targP)

    # Tiny final reduction + batch normalization in plain JAX.
    return jnp.sum(partials) / float(batch)


def yolo_v1_loss_ref(pred, target, *, class_num, lambda_coord=5.0, lambda_noobj=0.5):
    """Pure-JAX reference in the original channels-last layout (independent
    code path from the kernel: own grid construction, own gather/masking)."""
    batch, S, _, N = pred.shape
    B = (N - class_num) // 5
    pred = pred.astype(jnp.float32)
    target = target.astype(jnp.float32)

    ys, xs = jnp.meshgrid(jnp.arange(S, dtype=jnp.float32),
                          jnp.arange(S, dtype=jnp.float32), indexing="ij")
    gx = xs[None]      # column index added to x
    gy = ys[None]      # row index added to y

    tconf = target[..., 4]
    obj = tconf == 1.0
    noobj = tconf < 1.0

    gt_x = (target[..., 0] + gx) / S
    gt_y = (target[..., 1] + gy) / S
    gt_w = target[..., 2]
    gt_h = target[..., 3]
    gt_x1, gt_y1 = gt_x - 0.5 * gt_w, gt_y - 0.5 * gt_h
    gt_x2, gt_y2 = gt_x + 0.5 * gt_w, gt_y + 0.5 * gt_h
    gt_area = gt_w * gt_h

    ious, confs = [], []
    for b in range(B):
        px = (pred[..., 5 * b + 0] + gx) / S
        py = (pred[..., 5 * b + 1] + gy) / S
        pw = pred[..., 5 * b + 2]
        ph = pred[..., 5 * b + 3]
        px1, py1 = px - 0.5 * pw, py - 0.5 * ph
        px2, py2 = px + 0.5 * pw, py + 0.5 * ph
        iw = jnp.maximum(0.0, jnp.minimum(gt_x2, px2) - jnp.maximum(gt_x1, px1))
        ih = jnp.maximum(0.0, jnp.minimum(gt_y2, py2) - jnp.maximum(gt_y1, py1))
        inter = iw * ih
        union = gt_area + pw * ph - inter
        ious.append(inter / jnp.maximum(union, 1e-10))
        confs.append(pred[..., 5 * b + 4])

    iou_stack = jnp.stack(ious, axis=-1)                     # [b,S,S,B]
    conf_stack = jnp.stack(confs, axis=-1)
    best_iou = jnp.max(iou_stack, axis=-1)
    best_idx = jnp.argmax(iou_stack, axis=-1)                # first-max ties

    boxes = pred[..., :5 * B].reshape(batch, S, S, B, 5)
    resp = jnp.take_along_axis(
        boxes, best_idx[..., None, None], axis=3)[..., 0, :]  # [b,S,S,5]

    resp_xy = jnp.clip(resp[..., 0:2], 0.0, 1.0)
    dxy = resp_xy - target[..., 0:2]
    loss_xy = lambda_coord * jnp.sum(dxy * dxy, axis=-1)

    dwh = (jnp.sqrt(jnp.maximum(resp[..., 2:4], 0.0)) -
           jnp.sqrt(jnp.maximum(target[..., 2:4], 0.0)))
    loss_wh = lambda_coord * jnp.sum(dwh * dwh, axis=-1)

    dcf = resp[..., 4] - best_iou
    loss_conf_posi = dcf * dcf

    dcls = pred[..., 5 * B:] - target[..., 5 * B:]
    loss_class = jnp.sum(dcls * dcls, axis=-1)

    onehot = jax.nn.one_hot(best_idx, B, dtype=jnp.float32)
    nega_sq = jnp.sum((1.0 - onehot) * conf_stack * conf_stack, axis=-1)
    all_sq = jnp.sum(conf_stack * conf_stack, axis=-1)

    obj_terms = loss_xy + loss_wh + loss_conf_posi + loss_class + lambda_noobj * nega_sq
    total = (jnp.sum(jnp.where(obj, obj_terms, 0.0)) +
             jnp.sum(jnp.where(noobj, lambda_noobj * all_sq, 0.0)))
    return total / float(batch)


if __name__ == "__main__":
    # TODO(synk): the per-object `print(' iou value ...')` debug statement of the
    # PyTorch loop is a pure side effect and is intentionally omitted.
    key = jax.random.PRNGKey(0)
    k_pred, k_targ, k_obj = jax.random.split(key, 3)

    batch, S, C, B = 2, 7, 4, 2          # small YOLOv1-like config
    N = 5 * B + C                        # 14 features per cell

    # Positive-valued predictions/targets (w, h in (0,1)) so sqrt() is finite,
    # matching what the PyTorch loss expects from a sigmoid-activated head.
    pred = jax.random.uniform(k_pred, (batch, S, S, N), jnp.float32, 0.05, 0.95)
    target = jax.random.uniform(k_targ, (batch, S, S, N), jnp.float32, 0.05, 0.95)
    obj = (jax.random.uniform(k_obj, (batch, S, S)) < 0.25).astype(jnp.float32)
    target = target.at[..., 4].set(obj)  # confidence channel: exactly 1.0 or 0.0

    loss = yolo_v1_loss(pred, target, class_num=C)
    loss = jax.block_until_ready(loss)

    ref = jax.block_until_ready(yolo_v1_loss_ref(pred, target, class_num=C))

    lv, rv = float(loss), float(ref)
    assert math.isfinite(lv), f"non-finite loss: {lv}"
    assert abs(lv - rv) <= 1e-3 * max(1.0, abs(rv)), f"mismatch: {lv} vs {rv}"
    print("KERNEL_OK")
</pallas_src>

<mosaic_0001>
module attributes {stable_mosaic.version = 11 : i64} {
  func.func @_yolo_loss_kernel(%arg0: i32, %arg1: memref<1x14x8x128xf32, #tpu.memory_space<vmem>>, %arg2: memref<1x14x8x128xf32, #tpu.memory_space<vmem>>, %arg3: memref<1x8x128xf32, #tpu.memory_space<vmem>>) attributes {dimension_semantics = [#tpu.dimension_semantics<parallel>], iteration_bounds = array<i64: 1>, scalar_prefetch = 0 : i64, scratch_operands = 0 : i64, tpu.core_type = #tpu.core_type<tc>, window_params = [{transform_indices = @transform_0, window_bounds = array<i64: 1, 14, 8, 128>}, {transform_indices = @transform_1, window_bounds = array<i64: 1, 14, 8, 128>}, {transform_indices = @transform_2, window_bounds = array<i64: 1, 8, 128>}]} {
    %0 = tpu.iota {dimensions = array<i32: 0>} : vector<8x128xi32>
    %1 = tpu.iota {dimensions = array<i32: 1>} : vector<8x128xi32>
    %cst = arith.constant 0.000000e+00 : f32
    %2 = vector.broadcast %cst : f32 to vector<8x128xf32>
    %c0_i32 = arith.constant 0 : i32
    %c1_i32 = arith.constant 1 : i32
    %3 = arith.muli %arg0, %c1_i32 : i32
    %4 = arith.addi %3, %c0_i32 : i32
    %c1024_i32 = arith.constant 1024 : i32
    %5 = arith.muli %4, %c1024_i32 : i32
    %c128_i32 = arith.constant 128 : i32
    %6 = vector.broadcast %c128_i32 : i32 to vector<8x128xi32>
    %7 = arith.muli %0, %6 : vector<8x128xi32>
    %8 = vector.broadcast %5 : i32 to vector<8x128xi32>
    %9 = arith.addi %8, %7 : vector<8x128xi32>
    %10 = arith.addi %9, %1 : vector<8x128xi32>
    %11 = arith.sitofp %10 : vector<8x128xi32> to vector<8x128xf32>
    %cst_0 = arith.constant 7.000000e+00 : f32
    %12 = vector.broadcast %cst_0 : f32 to vector<8x128xf32>
    %13 = arith.divf %11, %12 : vector<8x128xf32>
    %14 = math.floor %13 : vector<8x128xf32>
    %cst_1 = arith.constant 7.000000e+00 : f32
    %15 = vector.broadcast %cst_1 : f32 to vector<8x128xf32>
    %16 = arith.mulf %15, %14 : vector<8x128xf32>
    %17 = arith.subf %11, %16 : vector<8x128xf32>
    %cst_2 = arith.constant 7.000000e+00 : f32
    %18 = vector.broadcast %cst_2 : f32 to vector<8x128xf32>
    %19 = arith.divf %14, %18 : vector<8x128xf32>
    %20 = math.floor %19 : vector<8x128xf32>
    %cst_3 = arith.constant 7.000000e+00 : f32
    %21 = vector.broadcast %cst_3 : f32 to vector<8x128xf32>
    %22 = arith.mulf %21, %20 : vector<8x128xf32>
    %23 = arith.subf %14, %22 : vector<8x128xf32>
    %24 = arith.index_cast %c0_i32 : i32 to index
    %c4 = arith.constant 4 : index
    %c0 = arith.constant 0 : index
    %c0_4 = arith.constant 0 : index
    %25 = vector.load %arg2[%24, %c4, %c0, %c0_4] : memref<1x14x8x128xf32, #tpu.memory_space<vmem>>, vector<1x1x8x128xf32>
    %26 = vector.shape_cast %25 : vector<1x1x8x128xf32> to vector<8x128xf32>
    %cst_5 = arith.constant 1.000000e+00 : f32
    %27 = vector.broadcast %cst_5 : f32 to vector<8x128xf32>
    %28 = arith.cmpf oeq, %26, %27 : vector<8x128xf32>
    %cst_6 = arith.constant 1.000000e+00 : f32
    %29 = vector.broadcast %cst_6 : f32 to vector<8x128xf32>
    %30 = arith.cmpf olt, %26, %29 : vector<8x128xf32>
    %31 = arith.index_cast %c0_i32 : i32 to index
    %c0_7 = arith.constant 0 : index
    %c0_8 = arith.constant 0 : index
    %c0_9 = arith.constant 0 : index
    %32 = vector.load %arg2[%31, %c0_7, %c0_8, %c0_9] : memref<1x14x8x128xf32, #tpu.memory_space<vmem>>, vector<1x1x8x128xf32>
    %33 = vector.shape_cast %32 : vector<1x1x8x128xf32> to vector<8x128xf32>
    %34 = arith.index_cast %c0_i32 : i32 to index
    %c1 = arith.constant 1 : index
    %c0_10 = arith.constant 0 : index
    %c0_11 = arith.constant 0 : index
    %35 = vector.load %arg2[%34, %c1, %c0_10, %c0_11] : memref<1x14x8x128xf32, #tpu.memory_space<vmem>>, vector<1x1x8x128xf32>
    %36 = vector.shape_cast %35 : vector<1x1x8x128xf32> to vector<8x128xf32>
    %37 = arith.index_cast %c0_i32 : i32 to index
    %c2 = arith.constant 2 : index
    %c0_12 = arith.constant 0 : index
    %c0_13 = arith.constant 0 : index
    %38 = vector.load %arg2[%37, %c2, %c0_12, %c0_13] : memref<1x14x8x128xf32, #tpu.memory_space<vmem>>, vector<1x1x8x128xf32>
    %39 = vector.shape_cast %38 : vector<1x1x8x128xf32> to vector<8x128xf32>
    %40 = arith.index_cast %c0_i32 : i32 to index
    %c3 = arith.constant 3 : index
    %c0_14 = arith.constant 0 : index
    %c0_15 = arith.constant 0 : index
    %41 = vector.load %arg2[%40, %c3, %c0_14, %c0_15] : memref<1x14x8x128xf32, #tpu.memory_space<vmem>>, vector<1x1x8x128xf32>
    %42 = vector.shape_cast %41 : vector<1x1x8x128xf32> to vector<8x128xf32>
    %43 = arith.addf %33, %17 : vector<8x128xf32>
    %cst_16 = arith.constant 0.142857149 : f32
    %44 = vector.broadcast %cst_16 : f32 to vector<8x128xf32>
    %45 = arith.mulf %43, %44 : vector<8x128xf32>
    %46 = arith.addf %36, %23 : vector<8x128xf32>
    %cst_17 = arith.constant 0.142857149 : f32
    %47 = vector.broadcast %cst_17 : f32 to vector<8x128xf32>
    %48 = arith.mulf %46, %47 : vector<8x128xf32>
    %cst_18 = arith.constant 5.000000e-01 : f32
    %49 = vector.broadcast %cst_18 : f32 to vector<8x128xf32>
    %50 = arith.mulf %49, %39 : vector<8x128xf32>
    %51 = arith.subf %45, %50 : vector<8x128xf32>
    %cst_19 = arith.constant 5.000000e-01 : f32
    %52 = vector.broadcast %cst_19 : f32 to vector<8x128xf32>
    %53 = arith.mulf %52, %39 : vector<8x128xf32>
    %54 = arith.addf %45, %53 : vector<8x128xf32>
    %cst_20 = arith.constant 5.000000e-01 : f32
    %55 = vector.broadcast %cst_20 : f32 to vector<8x128xf32>
    %56 = arith.mulf %55, %42 : vector<8x128xf32>
    %57 = arith.subf %48, %56 : vector<8x128xf32>
    %cst_21 = arith.constant 5.000000e-01 : f32
    %58 = vector.broadcast %cst_21 : f32 to vector<8x128xf32>
    %59 = arith.mulf %58, %42 : vector<8x128xf32>
    %60 = arith.addf %48, %59 : vector<8x128xf32>
    %61 = arith.mulf %39, %42 : vector<8x128xf32>
    %62 = arith.index_cast %c0_i32 : i32 to index
    %c0_22 = arith.constant 0 : index
    %c0_23 = arith.constant 0 : index
    %c0_24 = arith.constant 0 : index
    %63 = vector.load %arg1[%62, %c0_22, %c0_23, %c0_24] : memref<1x14x8x128xf32, #tpu.memory_space<vmem>>, vector<1x1x8x128xf32>
    %64 = vector.shape_cast %63 : vector<1x1x8x128xf32> to vector<8x128xf32>
    %65 = arith.index_cast %c0_i32 : i32 to index
    %c1_25 = arith.constant 1 : index
    %c0_26 = arith.constant 0 : index
    %c0_27 = arith.constant 0 : index
    %66 = vector.load %arg1[%65, %c1_25, %c0_26, %c0_27] : memref<1x14x8x128xf32, #tpu.memory_space<vmem>>, vector<1x1x8x128xf32>
    %67 = vector.shape_cast %66 : vector<1x1x8x128xf32> to vector<8x128xf32>
    %68 = arith.index_cast %c0_i32 : i32 to index
    %c2_28 = arith.constant 2 : index
    %c0_29 = arith.constant 0 : index
    %c0_30 = arith.constant 0 : index
    %69 = vector.load %arg1[%68, %c2_28, %c0_29, %c0_30] : memref<1x14x8x128xf32, #tpu.memory_space<vmem>>, vector<1x1x8x128xf32>
    %70 = vector.shape_cast %69 : vector<1x1x8x128xf32> to vector<8x128xf32>
    %71 = arith.index_cast %c0_i32 : i32 to index
    %c3_31 = arith.constant 3 : index
    %c0_32 = arith.constant 0 : index
    %c0_33 = arith.constant 0 : index
    %72 = vector.load %arg1[%71, %c3_31, %c0_32, %c0_33] : memref<1x14x8x128xf32, #tpu.memory_space<vmem>>, vector<1x1x8x128xf32>
    %73 = vector.shape_cast %72 : vector<1x1x8x128xf32> to vector<8x128xf32>
    %74 = arith.addf %64, %17 : vector<8x128xf32>
    %cst_34 = arith.constant 0.142857149 : f32
    %75 = vector.broadcast %cst_34 : f32 to vector<8x128xf32>
    %76 = arith.mulf %74, %75 : vector<8x128xf32>
    %77 = arith.addf %67, %23 : vector<8x128xf32>
    %cst_35 = arith.constant 0.142857149 : f32
    %78 = vector.broadcast %cst_35 : f32 to vector<8x128xf32>
    %79 = arith.mulf %77, %78 : vector<8x128xf32>
    %cst_36 = arith.constant 5.000000e-01 : f32
    %80 = vector.broadcast %cst_36 : f32 to vector<8x128xf32>
    %81 = arith.mulf %80, %70 : vector<8x128xf32>
    %82 = arith.addf %76, %81 : vector<8x128xf32>
    %83 = arith.minimumf %54, %82 : vector<8x128xf32>
    %cst_37 = arith.constant 5.000000e-01 : f32
    %84 = vector.broadcast %cst_37 : f32 to vector<8x128xf32>
    %85 = arith.mulf %84, %70 : vector<8x128xf32>
    %86 = arith.subf %76, %85 : vector<8x128xf32>
    %87 = arith.maximumf %51, %86 : vector<8x128xf32>
    %88 = arith.subf %83, %87 : vector<8x128xf32>
    %cst_38 = arith.constant 0.000000e+00 : f32
    %89 = vector.broadcast %cst_38 : f32 to vector<8x128xf32>
    %90 = arith.maximumf %88, %89 : vector<8x128xf32>
    %cst_39 = arith.constant 5.000000e-01 : f32
    %91 = vector.broadcast %cst_39 : f32 to vector<8x128xf32>
    %92 = arith.mulf %91, %73 : vector<8x128xf32>
    %93 = arith.addf %79, %92 : vector<8x128xf32>
    %94 = arith.minimumf %60, %93 : vector<8x128xf32>
    %cst_40 = arith.constant 5.000000e-01 : f32
    %95 = vector.broadcast %cst_40 : f32 to vector<8x128xf32>
    %96 = arith.mulf %95, %73 : vector<8x128xf32>
    %97 = arith.subf %79, %96 : vector<8x128xf32>
    %98 = arith.maximumf %57, %97 : vector<8x128xf32>
    %99 = arith.subf %94, %98 : vector<8x128xf32>
    %cst_41 = arith.constant 0.000000e+00 : f32
    %100 = vector.broadcast %cst_41 : f32 to vector<8x128xf32>
    %101 = arith.maximumf %99, %100 : vector<8x128xf32>
    %102 = arith.mulf %90, %101 : vector<8x128xf32>
    %103 = arith.mulf %70, %73 : vector<8x128xf32>
    %104 = arith.addf %61, %103 : vector<8x128xf32>
    %105 = arith.subf %104, %102 : vector<8x128xf32>
    %cst_42 = arith.constant 1.000000e-10 : f32
    %106 = vector.broadcast %cst_42 : f32 to vector<8x128xf32>
    %107 = arith.maximumf %105, %106 : vector<8x128xf32>
    %108 = tpu.reciprocal %107 {approx = true} : vector<8x128xf32> -> vector<8x128xf32>
    %109 = arith.mulf %107, %108 : vector<8x128xf32>
    %cst_43 = arith.constant 2.000000e+00 : f32
    %110 = vector.broadcast %cst_43 : f32 to vector<8x128xf32>
    %111 = arith.subf %110, %109 : vector<8x128xf32>
    %112 = arith.mulf %108, %111 : vector<8x128xf32>
    %113 = arith.mulf %102, %112 : vector<8x128xf32>
    %114 = arith.index_cast %c0_i32 : i32 to index
    %c4_44 = arith.constant 4 : index
    %c0_45 = arith.constant 0 : index
    %c0_46 = arith.constant 0 : index
    %115 = vector.load %arg1[%114, %c4_44, %c0_45, %c0_46] : memref<1x14x8x128xf32, #tpu.memory_space<vmem>>, vector<1x1x8x128xf32>
    %116 = vector.shape_cast %115 : vector<1x1x8x128xf32> to vector<8x128xf32>
    %117 = arith.index_cast %c0_i32 : i32 to index
    %c5 = arith.constant 5 : index
    %c0_47 = arith.constant 0 : index
    %c0_48 = arith.constant 0 : index
    %118 = vector.load %arg1[%117, %c5, %c0_47, %c0_48] : memref<1x14x8x128xf32, #tpu.memory_space<vmem>>, vector<1x1x8x128xf32>
    %119 = vector.shape_cast %118 : vector<1x1x8x128xf32> to vector<8x128xf32>
    %120 = arith.index_cast %c0_i32 : i32 to index
    %c6 = arith.constant 6 : index
    %c0_49 = arith.constant 0 : index
    %c0_50 = arith.constant 0 : index
    %121 = vector.load %arg1[%120, %c6, %c0_49, %c0_50] : memref<1x14x8x128xf32, #tpu.memory_space<vmem>>, vector<1x1x8x128xf32>
    %122 = vector.shape_cast %121 : vector<1x1x8x128xf32> to vector<8x128xf32>
    %123 = arith.index_cast %c0_i32 : i32 to index
    %c7 = arith.constant 7 : index
    %c0_51 = arith.constant 0 : index
    %c0_52 = arith.constant 0 : index
    %124 = vector.load %arg1[%123, %c7, %c0_51, %c0_52] : memref<1x14x8x128xf32, #tpu.memory_space<vmem>>, vector<1x1x8x128xf32>
    %125 = vector.shape_cast %124 : vector<1x1x8x128xf32> to vector<8x128xf32>
    %126 = arith.index_cast %c0_i32 : i32 to index
    %c8 = arith.constant 8 : index
    %c0_53 = arith.constant 0 : index
    %c0_54 = arith.constant 0 : index
    %127 = vector.load %arg1[%126, %c8, %c0_53, %c0_54] : memref<1x14x8x128xf32, #tpu.memory_space<vmem>>, vector<1x1x8x128xf32>
    %128 = vector.shape_cast %127 : vector<1x1x8x128xf32> to vector<8x128xf32>
    %129 = arith.addf %119, %17 : vector<8x128xf32>
    %cst_55 = arith.constant 0.142857149 : f32
    %130 = vector.broadcast %cst_55 : f32 to vector<8x128xf32>
    %131 = arith.mulf %129, %130 : vector<8x128xf32>
    %132 = arith.addf %122, %23 : vector<8x128xf32>
    %cst_56 = arith.constant 0.142857149 : f32
    %133 = vector.broadcast %cst_56 : f32 to vector<8x128xf32>
    %134 = arith.mulf %132, %133 : vector<8x128xf32>
    %cst_57 = arith.constant 5.000000e-01 : f32
    %135 = vector.broadcast %cst_57 : f32 to vector<8x128xf32>
    %136 = arith.mulf %135, %125 : vector<8x128xf32>
    %137 = arith.addf %131, %136 : vector<8x128xf32>
    %138 = arith.minimumf %54, %137 : vector<8x128xf32>
    %cst_58 = arith.constant 5.000000e-01 : f32
    %139 = vector.broadcast %cst_58 : f32 to vector<8x128xf32>
    %140 = arith.mulf %139, %125 : vector<8x128xf32>
    %141 = arith.subf %131, %140 : vector<8x128xf32>
    %142 = arith.maximumf %51, %141 : vector<8x128xf32>
    %143 = arith.subf %138, %142 : vector<8x128xf32>
    %cst_59 = arith.constant 0.000000e+00 : f32
    %144 = vector.broadcast %cst_59 : f32 to vector<8x128xf32>
    %145 = arith.maximumf %143, %144 : vector<8x128xf32>
    %cst_60 = arith.constant 5.000000e-01 : f32
    %146 = vector.broadcast %cst_60 : f32 to vector<8x128xf32>
    %147 = arith.mulf %146, %128 : vector<8x128xf32>
    %148 = arith.addf %134, %147 : vector<8x128xf32>
    %149 = arith.minimumf %60, %148 : vector<8x128xf32>
    %cst_61 = arith.constant 5.000000e-01 : f32
    %150 = vector.broadcast %cst_61 : f32 to vector<8x128xf32>
    %151 = arith.mulf %150, %128 : vector<8x128xf32>
    %152 = arith.subf %134, %151 : vector<8x128xf32>
    %153 = arith.maximumf %57, %152 : vector<8x128xf32>
    %154 = arith.subf %149, %153 : vector<8x128xf32>
    %cst_62 = arith.constant 0.000000e+00 : f32
    %155 = vector.broadcast %cst_62 : f32 to vector<8x128xf32>
    %156 = arith.maximumf %154, %155 : vector<8x128xf32>
    %157 = arith.mulf %145, %156 : vector<8x128xf32>
    %158 = arith.mulf %125, %128 : vector<8x128xf32>
    %159 = arith.addf %61, %158 : vector<8x128xf32>
    %160 = arith.subf %159, %157 : vector<8x128xf32>
    %cst_63 = arith.constant 1.000000e-10 : f32
    %161 = vector.broadcast %cst_63 : f32 to vector<8x128xf32>
    %162 = arith.maximumf %160, %161 : vector<8x128xf32>
    %163 = tpu.reciprocal %162 {approx = true} : vector<8x128xf32> -> vector<8x128xf32>
    %164 = arith.mulf %162, %163 : vector<8x128xf32>
    %cst_64 = arith.constant 2.000000e+00 : f32
    %165 = vector.broadcast %cst_64 : f32 to vector<8x128xf32>
    %166 = arith.subf %165, %164 : vector<8x128xf32>
    %167 = arith.mulf %163, %166 : vector<8x128xf32>
    %168 = arith.mulf %157, %167 : vector<8x128xf32>
    %169 = arith.index_cast %c0_i32 : i32 to index
    %c9 = arith.constant 9 : index
    %c0_65 = arith.constant 0 : index
    %c0_66 = arith.constant 0 : index
    %170 = vector.load %arg1[%169, %c9, %c0_65, %c0_66] : memref<1x14x8x128xf32, #tpu.memory_space<vmem>>, vector<1x1x8x128xf32>
    %171 = vector.shape_cast %170 : vector<1x1x8x128xf32> to vector<8x128xf32>
    %cst_67 = arith.constant 1.000000e+00 : f32
    %172 = vector.broadcast %cst_67 : f32 to vector<8x128xf32>
    %173 = arith.cmpf ogt, %168, %113 : vector<8x128xf32>
    %174 = arith.select %173, %168, %113 : vector<8x128xi1>, vector<8x128xf32>
    %175 = arith.extui %173 : vector<8x128xi1> to vector<8x128xi32>
    %176 = arith.sitofp %175 : vector<8x128xi32> to vector<8x128xf32>
    %cst_68 = arith.constant 1.000000e+00 : f32
    %177 = vector.broadcast %cst_68 : f32 to vector<8x128xf32>
    %178 = arith.subf %177, %176 : vector<8x128xf32>
    %179 = arith.mulf %172, %178 : vector<8x128xf32>
    %180 = arith.mulf %179, %64 : vector<8x128xf32>
    %181 = arith.mulf %179, %67 : vector<8x128xf32>
    %182 = arith.mulf %179, %70 : vector<8x128xf32>
    %183 = arith.mulf %179, %73 : vector<8x128xf32>
    %184 = arith.mulf %179, %116 : vector<8x128xf32>
    %185 = arith.mulf %116, %116 : vector<8x128xf32>
    %186 = arith.mulf %176, %119 : vector<8x128xf32>
    %187 = arith.addf %180, %186 : vector<8x128xf32>
    %188 = arith.mulf %176, %122 : vector<8x128xf32>
    %189 = arith.addf %181, %188 : vector<8x128xf32>
    %190 = arith.mulf %176, %125 : vector<8x128xf32>
    %191 = arith.addf %182, %190 : vector<8x128xf32>
    %192 = arith.mulf %176, %128 : vector<8x128xf32>
    %193 = arith.addf %183, %192 : vector<8x128xf32>
    %194 = arith.mulf %176, %171 : vector<8x128xf32>
    %195 = arith.addf %184, %194 : vector<8x128xf32>
    %196 = arith.mulf %171, %171 : vector<8x128xf32>
    %197 = arith.addf %185, %196 : vector<8x128xf32>
    %198 = arith.mulf %195, %195 : vector<8x128xf32>
    %199 = arith.subf %197, %198 : vector<8x128xf32>
    %cst_69 = arith.constant 0.000000e+00 : f32
    %cst_70 = arith.constant 1.000000e+00 : f32
    %200 = vector.broadcast %cst_69 : f32 to vector<8x128xf32>
    %201 = arith.maximumf %200, %187 : vector<8x128xf32>
    %202 = vector.broadcast %cst_70 : f32 to vector<8x128xf32>
    %203 = arith.minimumf %202, %201 : vector<8x128xf32>
    %204 = arith.subf %203, %33 : vector<8x128xf32>
    %cst_71 = arith.constant 0.000000e+00 : f32
    %cst_72 = arith.constant 1.000000e+00 : f32
    %205 = vector.broadcast %cst_71 : f32 to vector<8x128xf32>
    %206 = arith.maximumf %205, %189 : vector<8x128xf32>
    %207 = vector.broadcast %cst_72 : f32 to vector<8x128xf32>
    %208 = arith.minimumf %207, %206 : vector<8x128xf32>
    %209 = arith.subf %208, %36 : vector<8x128xf32>
    %cst_73 = arith.constant 0.000000e+00 : f32
    %210 = vector.broadcast %cst_73 : f32 to vector<8x128xf32>
    %211 = arith.maximumf %191, %210 : vector<8x128xf32>
    %212 = math.sqrt %211 : vector<8x128xf32>
    %cst_74 = arith.constant 0.000000e+00 : f32
    %213 = vector.broadcast %cst_74 : f32 to vector<8x128xf32>
    %214 = arith.maximumf %39, %213 : vector<8x128xf32>
    %215 = math.sqrt %214 : vector<8x128xf32>
    %216 = arith.subf %212, %215 : vector<8x128xf32>
    %cst_75 = arith.constant 0.000000e+00 : f32
    %217 = vector.broadcast %cst_75 : f32 to vector<8x128xf32>
    %218 = arith.maximumf %193, %217 : vector<8x128xf32>
    %219 = math.sqrt %218 : vector<8x128xf32>
    %cst_76 = arith.constant 0.000000e+00 : f32
    %220 = vector.broadcast %cst_76 : f32 to vector<8x128xf32>
    %221 = arith.maximumf %42, %220 : vector<8x128xf32>
    %222 = math.sqrt %221 : vector<8x128xf32>
    %223 = arith.subf %219, %222 : vector<8x128xf32>
    %224 = arith.subf %195, %174 : vector<8x128xf32>
    %cst_77 = arith.constant 0.000000e+00 : f32
    %225 = vector.broadcast %cst_77 : f32 to vector<8x128xf32>
    %226 = arith.index_cast %c0_i32 : i32 to index
    %c10 = arith.constant 10 : index
    %c0_78 = arith.constant 0 : index
    %c0_79 = arith.constant 0 : index
    %227 = vector.load %arg1[%226, %c10, %c0_78, %c0_79] : memref<1x14x8x128xf32, #tpu.memory_space<vmem>>, vector<1x1x8x128xf32>
    %228 = vector.shape_cast %227 : vector<1x1x8x128xf32> to vector<8x128xf32>
    %229 = arith.index_cast %c0_i32 : i32 to index
    %c10_80 = arith.constant 10 : index
    %c0_81 = arith.constant 0 : index
    %c0_82 = arith.constant 0 : index
    %230 = vector.load %arg2[%229, %c10_80, %c0_81, %c0_82] : memref<1x14x8x128xf32, #tpu.memory_space<vmem>>, vector<1x1x8x128xf32>
    %231 = vector.shape_cast %230 : vector<1x1x8x128xf32> to vector<8x128xf32>
    %232 = arith.subf %228, %231 : vector<8x128xf32>
    %233 = arith.mulf %232, %232 : vector<8x128xf32>
    %234 = arith.addf %225, %233 : vector<8x128xf32>
    %235 = arith.index_cast %c0_i32 : i32 to index
    %c11 = arith.constant 11 : index
    %c0_83 = arith.constant 0 : index
    %c0_84 = arith.constant 0 : index
    %236 = vector.load %arg1[%235, %c11, %c0_83, %c0_84] : memref<1x14x8x128xf32, #tpu.memory_space<vmem>>, vector<1x1x8x128xf32>
    %237 = vector.shape_cast %236 : vector<1x1x8x128xf32> to vector<8x128xf32>
    %238 = arith.index_cast %c0_i32 : i32 to index
    %c11_85 = arith.constant 11 : index
    %c0_86 = arith.constant 0 : index
    %c0_87 = arith.constant 0 : index
    %239 = vector.load %arg2[%238, %c11_85, %c0_86, %c0_87] : memref<1x14x8x128xf32, #tpu.memory_space<vmem>>, vector<1x1x8x128xf32>
    %240 = vector.shape_cast %239 : vector<1x1x8x128xf32> to vector<8x128xf32>
    %241 = arith.subf %237, %240 : vector<8x128xf32>
    %242 = arith.mulf %241, %241 : vector<8x128xf32>
    %243 = arith.addf %234, %242 : vector<8x128xf32>
    %244 = arith.index_cast %c0_i32 : i32 to index
    %c12 = arith.constant 12 : index
    %c0_88 = arith.constant 0 : index
    %c0_89 = arith.constant 0 : index
    %245 = vector.load %arg1[%244, %c12, %c0_88, %c0_89] : memref<1x14x8x128xf32, #tpu.memory_space<vmem>>, vector<1x1x8x128xf32>
    %246 = vector.shape_cast %245 : vector<1x1x8x128xf32> to vector<8x128xf32>
    %247 = arith.index_cast %c0_i32 : i32 to index
    %c12_90 = arith.constant 12 : index
    %c0_91 = arith.constant 0 : index
    %c0_92 = arith.constant 0 : index
    %248 = vector.load %arg2[%247, %c12_90, %c0_91, %c0_92] : memref<1x14x8x128xf32, #tpu.memory_space<vmem>>, vector<1x1x8x128xf32>
    %249 = vector.shape_cast %248 : vector<1x1x8x128xf32> to vector<8x128xf32>
    %250 = arith.subf %246, %249 : vector<8x128xf32>
    %251 = arith.mulf %250, %250 : vector<8x128xf32>
    %252 = arith.addf %243, %251 : vector<8x128xf32>
    %253 = arith.index_cast %c0_i32 : i32 to index
    %c13 = arith.constant 13 : index
    %c0_93 = arith.constant 0 : index
    %c0_94 = arith.constant 0 : index
    %254 = vector.load %arg1[%253, %c13, %c0_93, %c0_94] : memref<1x14x8x128xf32, #tpu.memory_space<vmem>>, vector<1x1x8x128xf32>
    %255 = vector.shape_cast %254 : vector<1x1x8x128xf32> to vector<8x128xf32>
    %256 = arith.index_cast %c0_i32 : i32 to index
    %c13_95 = arith.constant 13 : index
    %c0_96 = arith.constant 0 : index
    %c0_97 = arith.constant 0 : index
    %257 = vector.load %arg2[%256, %c13_95, %c0_96, %c0_97] : memref<1x14x8x128xf32, #tpu.memory_space<vmem>>, vector<1x1x8x128xf32>
    %258 = vector.shape_cast %257 : vector<1x1x8x128xf32> to vector<8x128xf32>
    %259 = arith.subf %255, %258 : vector<8x128xf32>
    %260 = arith.mulf %259, %259 : vector<8x128xf32>
    %261 = arith.addf %252, %260 : vector<8x128xf32>
    %262 = arith.mulf %204, %204 : vector<8x128xf32>
    %263 = arith.mulf %209, %209 : vector<8x128xf32>
    %264 = arith.addf %262, %263 : vector<8x128xf32>
    %265 = arith.mulf %216, %216 : vector<8x128xf32>
    %266 = arith.addf %264, %265 : vector<8x128xf32>
    %267 = arith.mulf %223, %223 : vector<8x128xf32>
    %268 = arith.addf %266, %267 : vector<8x128xf32>
    %cst_98 = arith.constant 5.000000e+00 : f32
    %269 = vector.broadcast %cst_98 : f32 to vector<8x128xf32>
    %270 = arith.mulf %269, %268 : vector<8x128xf32>
    %271 = arith.mulf %224, %224 : vector<8x128xf32>
    %272 = arith.addf %270, %271 : vector<8x128xf32>
    %273 = arith.addf %272, %261 : vector<8x128xf32>
    %cst_99 = arith.constant 5.000000e-01 : f32
    %274 = vector.broadcast %cst_99 : f32 to vector<8x128xf32>
    %275 = arith.mulf %274, %199 : vector<8x128xf32>
    %276 = arith.addf %273, %275 : vector<8x128xf32>
    %cst_100 = arith.constant 0.000000e+00 : f32
    %277 = vector.broadcast %cst_100 : f32 to vector<8x128xf32>
    %278 = arith.select %28, %276, %277 : vector<8x128xi1>, vector<8x128xf32>
    %cst_101 = arith.constant 5.000000e-01 : f32
    %279 = vector.broadcast %cst_101 : f32 to vector<8x128xf32>
    %280 = arith.mulf %279, %197 : vector<8x128xf32>
    %cst_102 = arith.constant 0.000000e+00 : f32
    %281 = vector.broadcast %cst_102 : f32 to vector<8x128xf32>
    %282 = arith.select %30, %280, %281 : vector<8x128xi1>, vector<8x128xf32>
    %283 = arith.addf %278, %282 : vector<8x128xf32>
    %284 = arith.addf %2, %283 : vector<8x128xf32>
    %c1_i32_103 = arith.constant 1 : i32
    %c0_104 = arith.constant 0 : index
    %c0_105 = arith.constant 0 : index
    %c0_106 = arith.constant 0 : index
    %285 = vector.load %arg3[%c0_104, %c0_105, %c0_106] : memref<1x8x128xf32, #tpu.memory_space<vmem>>, vector<1x8x128xf32>
    %286 = vector.shape_cast %285 : vector<1x8x128xf32> to vector<8x128xf32>
    %287 = vector.shape_cast %284 : vector<8x128xf32> to vector<1x8x128xf32>
    tpu.vector_store %arg3[%c0_104, %c0_105, %c0_106], %287 {strides = array<i32>} : memref<1x8x128xf32, #tpu.memory_space<vmem>>, vector<1x8x128xf32>,
    return
  }
  func.func @transform_0(%arg0: i32) -> (i32, i32, i32, i32) {
    %c0_i32 = arith.constant 0 : i32
    %c0_i32_0 = arith.constant 0 : i32
    %c0_i32_1 = arith.constant 0 : i32
    %c0_i32_2 = arith.constant 0 : i32
    return %arg0, %c0_i32, %c0_i32_0, %c0_i32_1 : i32, i32, i32, i32
  }
  func.func @transform_1(%arg0: i32) -> (i32, i32, i32, i32) {
    %c0_i32 = arith.constant 0 : i32
    %c0_i32_0 = arith.constant 0 : i32
    %c0_i32_1 = arith.constant 0 : i32
    %c0_i32_2 = arith.constant 0 : i32
    return %arg0, %c0_i32, %c0_i32_0, %c0_i32_1 : i32, i32, i32, i32
  }
  func.func @transform_2(%arg0: i32) -> (i32, i32, i32) {
    %c0_i32 = arith.constant 0 : i32
    %c0_i32_0 = arith.constant 0 : i32
    %c0_i32_1 = arith.constant 0 : i32
    return %arg0, %c0_i32, %c0_i32_0 : i32, i32, i32
  }
}

</mosaic_0001>

<bundles_post_ra>
// kernel: tpu_custom_call.1
= control target key start
LH: loop header
LB: loop body
LE: loop exit
PB: predicated region body
PF: predicated region fallthrough
CT: control target
= control target key end

     0   :  { %7 = vsyncpa [#allocation3], 0  ;;  %s570_s0 = inlined_call_operand.hbm [shape: f32[1,14,8,128], index: 0, kind: input, shape index: {}]   ;;  %s571_s1 = inlined_call_operand.hbm [shape: f32[1,14,8,128], index: 1, kind: input, shape index: {}]   ;;  %s572_s2 = inlined_call_operand.hbm [shape: f32[1,8,128], index: 2, kind: output, shape index: {}]  }
   0x1   :  { %8 = vsyncpa [#allocation6], 0 }
   0x2   :  { %9 = vsyncpa [#allocation4], 0  ;;  %s14_s11 = sshll.u32 %s570_s0, 4  ;;  %s417_s12 = smov [#allocation2]   ;;  %s15_s11 = int_to_ptr.hbm [resolvable:$true] %s14_s11 }
   0x3   :  { %s16_s13 = sshll.u32 %s417_s12, 4  ;;  %s27_s16 = sshll.u32 %s571_s1, 4  ;;  %s17_s13 = int_to_ptr.vmem [resolvable:$true] %s16_s13  ;;  %s28_s16 = int_to_ptr.hbm [resolvable:$true] %s27_s16 }
   0x4   :  { %s418_s17 = smov 128   ;;  %s419_s18 = smov 8  }
   0x5   :  { %22 = dma.hbm_to_vmem [thread:$0]  %s15_s11, 1792, %s17_s13, [#allocation3], %s418_s17, %s418_s17, %s419_s18  }
   0x6   :  { %s420_s19 = smov [#allocation5]  }
   0x7   :  { %s29_s20 = sshll.u32 %s420_s19, 4  ;;  %s30_s20 = int_to_ptr.vmem [resolvable:$true] %s29_s20 }
   0x8   :  { %35 = dma.hbm_to_vmem [thread:$0]  %s28_s16, 1792, %s30_s20, [#allocation6], %s418_s17, %s418_s17, %s419_s18  }
   0x9   :  { %411 = dma.done.wait [#allocation3], 1792  }
   0xa   :  { %412 = vsyncadd [#allocation3], 4294965504 }
   0xb   :  { %413 = dma.done.wait [#allocation6], 1792  }
   0xc   :  { %414 = vsyncadd [#allocation6], 4294965504  ;;  %v44_v0 = vlaneseq  ;;  %v421_v1 = vmov 7.0   ;;  %v445_v17 = vld [vmem:[#allocation5 + $0x10] sm:$0xff]  ;;  %v447_v18 = vld [vmem:[#allocation5] sm:$0xff]  ;;  %s423_s0 = smov [#allocation7]  }
   0xd   :  { %325 = vrcp.f32 %v421_v1  ;;  %v449_v19 = vld [vmem:[#allocation2] sm:$0xff]  ;;  %v451_v20 = vld [vmem:[#allocation2 + $0x28] sm:$0xff]  ;;  %v453_v23 = vld [vmem:[#allocation2 + $0x10] sm:$0xff]  ;;  %v84_v25 = vmul.f32 0.5, %v445_v17  ;;  %s304_s1 = sshll.u32 %s423_s0, 4  ;;  %s306_s23 = sshll.u32 %s572_s2, 4  ;;  %s305_s1 = int_to_ptr.vmem [resolvable:$true] %s304_s1  ;;  %s307_s23 = int_to_ptr.hbm [resolvable:$true] %s306_s23 }
   0xe   :  { %v45_v2 = vshrl.u32 %v44_v0, 7  ;;  %v47_v3 = vand.u32 127, %v44_v0  ;;  %v455_v24 = vld [vmem:[#allocation2 + $0x38] sm:$0xff]  ;;  %v458_v27 = vld [vmem:[#allocation5 + $0x18] sm:$0xff]  ;;  %v464_v31 = vld [vmem:[#allocation2 + $0x40] sm:$0xff]  ;;  %v102_v35 = vmul.f32 0.5, %v453_v23 }
   0xf   :  { %v461_v29 = vld [vmem:[#allocation2 + $0x18] sm:$0xff]  ;;  %v469_v34 = vld [vmem:[#allocation2 + $0x8] sm:$0xff]  ;;  %v472_v36 = vld [vmem:[#allocation2 + $0x30] sm:$0xff]  ;;  %v140_v37 = vmul.f32 0.5, %v455_v24  ;;  %v87_v42 = vmul.f32 0.5, %v458_v27  ;;  %v147_v44 = vmul.f32 0.5, %v464_v31 }
  0x10   :  { %v49_v4 = vmul.u32 128, %v45_v2  ;;  %v467_v33 = vld [vmem:[#allocation5 + $0x8] sm:$0xff]  ;;  %v109_v43 = vmul.f32 0.5, %v461_v29 }
  0x12   :  { %v52_v7 = vadd.s32 %v49_v4, %v47_v3  ;;  %v90_v4 = vmul.f32 %v458_v27, %v445_v17 }
  0x13   :  { %v326_v5 = vpop.eup %325 }
  0x14   :  { %v55_v6 = vmul.f32 7.0, %v326_v5  ;;  %v53_v10 = vcvt.s32.f32 %v52_v7  ;;  %vm59_vm0 = vweird.f32 %v326_v5  ;;  %v117_v7 = vmul.f32 %v461_v29, %v453_v23 }
  0x16   :  { %v56_v8 = vsub.f32 1.0, %v55_v6 }
  0x18   :  { %v57_v9 = vmul.f32 %v326_v5, %v56_v8 }
  0x1a   :  { %v58_v11 = vadd.f32 %v326_v5, %v57_v9 }
  0x1c   :  { %v60_v12 = vsel %vm59_vm0, %v326_v5, %v58_v11  ;;  %v155_v11 = vmul.f32 %v464_v31, %v455_v24 }
  0x1d   :  { %v61_v13 = vmul.f32 %v60_v12, %v53_v10 }
  0x1f   :  { %v62_v14 = vfloor.f32 %v61_v13 }
  0x21   :  { %v63_v15 = vmul.f32 7.0, %v62_v14  ;;  %v65_v16 = vmul.f32 %v62_v14, %v60_v12 }
  0x23   :  { %v64_v21 = vsub.f32 %v53_v10, %v63_v15  ;;  %v66_v22 = vfloor.f32 %v65_v16 }
  0x25   :  { %v67_v26 = vmul.f32 7.0, %v66_v22  ;;  %v80_v28 = vadd.f32 %v447_v18, %v64_v21  ;;  %v98_v30 = vadd.f32 %v449_v19, %v64_v21  ;;  %v136_v32 = vadd.f32 %v451_v20, %v64_v21 }
  0x26   :  { %v118_v21 = vadd.f32 %v117_v7, %v90_v4 }
  0x27   :  { %v68_v38 = vsub.f32 %v62_v14, %v67_v26  ;;  %v81_v39 = vmul.f32 0.14285715, %v80_v28  ;;  %v99_v40 = vmul.f32 0.14285715, %v98_v30  ;;  %v137_v41 = vmul.f32 0.14285715, %v136_v32 }
  0x29   :  { %v82_v45 = vadd.f32 %v467_v33, %v68_v38  ;;  %v85_v46 = vsub.f32 %v81_v39, %v84_v25  ;;  %v86_v47 = vadd.f32 %v84_v25, %v81_v39  ;;  %v100_v48 = vadd.f32 %v469_v34, %v68_v38 }
  0x2a   :  { %v103_v49 = vadd.f32 %v102_v35, %v99_v40  ;;  %v105_v50 = vsub.f32 %v99_v40, %v102_v35  ;;  %v138_v51 = vadd.f32 %v472_v36, %v68_v38  ;;  %v141_v52 = vadd.f32 %v140_v37, %v137_v41 }
  0x2b   :  { %v83_v53 = vmul.f32 0.14285715, %v82_v45  ;;  %v101_v54 = vmul.f32 0.14285715, %v100_v48  ;;  %v143_v55 = vsub.f32 %v137_v41, %v140_v37  ;;  %v156_v25 = vadd.f32 %v155_v11, %v90_v4  ;;  %v253_v11 = vld [vmem:[#allocation2 + $0x50] sm:$0xff] }
  0x2c   :  { %v104_v56 = vmin.f32 %v86_v47, %v103_v49  ;;  %v106_v57 = vmax.f32 %v85_v46, %v105_v50  ;;  %v139_v58 = vmul.f32 0.14285715, %v138_v51  ;;  %v142_v59 = vmin.f32 %v86_v47, %v141_v52 }
  0x2d   :  { %v88_v60 = vsub.f32 %v83_v53, %v87_v42  ;;  %v89_v61 = vadd.f32 %v87_v42, %v83_v53  ;;  %v110_v62 = vadd.f32 %v109_v43, %v101_v54  ;;  %v112_v63 = vsub.f32 %v101_v54, %v109_v43 }
  0x2e   :  { %v107_v0 = vsub.f32 %v104_v56, %v106_v57  ;;  %v144_v1 = vmax.f32 %v85_v46, %v143_v55  ;;  %v148_v2 = vadd.f32 %v147_v44, %v139_v58  ;;  %v150_v3 = vsub.f32 %v139_v58, %v147_v44 }
  0x2f   :  { %v111_v5 = vmin.f32 %v89_v61, %v110_v62  ;;  %v113_v6 = vmax.f32 %v88_v60, %v112_v63  ;;  %v488_v38 = vmax.f32 %v445_v17, 0.0  ;;  %v491_v39 = vmax.f32 %v458_v27, 0.0 }
  0x30   :  { %v145_v8 = vsub.f32 %v142_v59, %v144_v1  ;;  %v149_v9 = vmin.f32 %v89_v61, %v148_v2  ;;  %v151_v10 = vmax.f32 %v88_v60, %v150_v3  ;;  %v108_v12 = vmax.f32 %v107_v0, 0.0 }
  0x31   :  { %v114_v13 = vsub.f32 %v111_v5, %v113_v6  ;;  %v422_v52 = vmov 0.0   ;;  %vm218_vm2 = vcmp.eq.f32.partialorder %v488_v38, inf  ;;  %vm245_vm3 = vcmp.eq.f32.partialorder %v491_v39, inf }
  0x32   :  { %v146_v14 = vmax.f32 %v145_v8, 0.0  ;;  %v152_v15 = vsub.f32 %v149_v9, %v151_v10  ;;  %vm220_vm4 = vcmp.eq.f32.partialorder %v488_v38, 0.0  ;;  %vm247_vm5 = vcmp.eq.f32.partialorder %v491_v39, 0.0 }
  0x33   :  { %v115_v16 = vmax.f32 %v114_v13, 0.0 }
  0x34   :  { %v153_v22 = vmax.f32 %v152_v15, 0.0  ;;  %v260_v15 = vld [vmem:[#allocation2 + $0x58] sm:$0xff] }
  0x35   :  { %v116_v26 = vmul.f32 %v115_v16, %v108_v12  ;;  %v255_v12 = vld [vmem:[#allocation5 + $0x50] sm:$0xff]  ;;  %v262_v16 = vld [vmem:[#allocation5 + $0x58] sm:$0xff] }
  0x36   :  { %v154_v28 = vmul.f32 %v153_v22, %v146_v14 }
  0x37   :  { %v119_v30 = vsub.f32 %v118_v21, %v116_v26  ;;  %v127_v21 = vld [vmem:[#allocation2 + $0x20] sm:$0xff] }
  0x38   :  { %v157_v32 = vsub.f32 %v156_v25, %v154_v28 }
  0x39   :  { %v120_v35 = vmax.f32 %v119_v30, 1e-10 }
  0x3a   :  { %v158_v37 = vmax.f32 %v157_v32, 1e-10  ;;  %v256_v32 = vsub.f32 %v253_v11, %v255_v12 }
  0x3b   :  { %327 = vrcp.f32 %v120_v35 }
  0x3c   :  { %329 = vrcp.f32 %v158_v37 }
  0x3d   :  { %331 = vrsqrt.f32 %v488_v38 }
  0x3e   :  { %333 = vrsqrt.f32 %v491_v39 }
  0x41   :  { %v328_v40 = vpop.eup %327 }
  0x42   :  { %v330_v41 = vpop.eup %329  ;;  %v122_v42 = vmul.f32 %v328_v40, %v120_v35  ;;  %v165_v35 = vld [vmem:[#allocation2 + $0x48] sm:$0xff] }
  0x43   :  { %v160_v43 = vmul.f32 %v330_v41, %v158_v37  ;;  %v332_v45 = vpop.eup %331 }
  0x44   :  { %v123_v44 = vsub.f32 2.0, %v122_v42  ;;  %v334_v47 = vpop.eup %333  ;;  %v212_v50 = vmul.f32 %v332_v45, %v488_v38  ;;  %v263_v42 = vsub.f32 %v260_v15, %v262_v16  ;;  %v70_v16 = vld [vmem:[#allocation5 + $0x20] sm:$0xff] }
  0x45   :  { %v161_v46 = vsub.f32 2.0, %v160_v43  ;;  %v239_v51 = vmul.f32 %v334_v47, %v491_v39  ;;  %vm72_vm10 = vcmp.lt.f32.partialorder %v70_v16, 1.0  ;;  %vm71_vm11 = vcmp.eq.f32.partialorder %v70_v16, 1.0 }
  0x46   :  { %v124_v48 = vmul.f32 %v328_v40, %v123_v44  ;;  %v213_v54 = vmul.f32 %v332_v45, %v212_v50 }
  0x47   :  { %v162_v49 = vmul.f32 %v330_v41, %v161_v46  ;;  %v240_v57 = vmul.f32 %v334_v47, %v239_v51  ;;  %v221_v41 = vand.u32 2147483648, %v488_v38  ;;  %v267_v46 = vld [vmem:[#allocation2 + $0x60] sm:$0xff] }
  0x48   :  { %v495_v17 = vmul.f32 %v124_v48, %v116_v26  ;;  %v214_v61 = vmul.f32 0.5, %v213_v54 }
  0x49   :  { %v498_v27 = vmul.f32 %v162_v49, %v154_v28  ;;  %v241_v0 = vmul.f32 0.5, %v240_v57  ;;  %v176_v28 = vmul.f32 %v127_v21, %v127_v21 }
  0x4b   :  { %vm166_vm1 = vcmp.gt.f32.partialorder %v498_v27, %v495_v17 }
  0x4c   :  { %v506_v53 = vsel %vm166_vm1, 1.0, %v422_v52 }
  0x4d   :  { %v170_v55 = vsub.f32 1.0, %v506_v53  ;;  %v181_v56 = vmul.f32 %v506_v53, %v455_v24  ;;  %v183_v58 = vmul.f32 %v506_v53, %v464_v31  ;;  %v177_v3 = vmul.f32 %v506_v53, %v451_v20 }
  0x4e   :  { %v179_v24 = vmul.f32 %v506_v53, %v472_v36  ;;  %v185_v52 = vmul.f32 %v506_v53, %v165_v35  ;;  %v276_v53 = vld [vmem:[#allocation5 + $0x68] sm:$0xff] }
  0x4f   :  { %v173_v59 = vmul.f32 %v170_v55, %v453_v23  ;;  %v174_v60 = vmul.f32 %v170_v55, %v461_v29  ;;  %v171_v1 = vmul.f32 %v170_v55, %v449_v19  ;;  %v172_v2 = vmul.f32 %v170_v55, %v469_v34 }
  0x50   :  { %v215_v23 = vsub.f32 1.5, %v214_v61  ;;  %v242_v29 = vsub.f32 1.5, %v241_v0  ;;  %v175_v51 = vmul.f32 %v170_v55, %v127_v21  ;;  %v274_v61 = vld [vmem:[#allocation2 + $0x68] sm:$0xff]  ;;  %v187_v0 = vmul.f32 %v165_v35, %v165_v35 }
  0x51   :  { %v182_v62 = vadd.f32 %v181_v56, %v173_v59  ;;  %v184_v63 = vadd.f32 %v183_v58, %v174_v60  ;;  %v178_v5 = vadd.f32 %v177_v3, %v171_v1  ;;  %v180_v6 = vadd.f32 %v179_v24, %v172_v2 }
  0x52   :  { %v216_v19 = vmul.f32 %v332_v45, %v215_v23  ;;  %v243_v34 = vmul.f32 %v334_v47, %v242_v29  ;;  %v248_v45 = vand.u32 2147483648, %v491_v39  ;;  %v269_v47 = vld [vmem:[#allocation5 + $0x60] sm:$0xff]  ;;  %v257_v56 = vmul.f32 %v256_v32, %v256_v32 }
  0x53   :  { %v521_v4 = vmax.f32 %v182_v62, 0.0  ;;  %v523_v31 = vmax.f32 %v184_v63, 0.0  ;;  %v191_v7 = vmax.f32 %v178_v5, 0.0  ;;  %v194_v8 = vmax.f32 %v180_v6, 0.0 }
  0x54   :  { %v217_v10 = vmul.f32 %v216_v19, %v488_v38  ;;  %v244_v14 = vmul.f32 %v243_v34, %v491_v39  ;;  %v264_v58 = vmul.f32 %v263_v42, %v263_v42  ;;  %v270_v59 = vsub.f32 %v267_v46, %v269_v47 }
  0x55   :  { %335 = vrsqrt.f32 %v521_v4  ;;  %v192_v22 = vmin.f32 %v191_v7, 1.0  ;;  %v195_v25 = vmin.f32 %v194_v8, 1.0  ;;  %vm205_vm6 = vcmp.eq.f32.partialorder %v521_v4, inf }
  0x56   :  { %337 = vrsqrt.f32 %v523_v31  ;;  %v219_v40 = vsel %vm218_vm2, %v488_v38, %v217_v10  ;;  %v246_v44 = vsel %vm245_vm3, %v491_v39, %v244_v14  ;;  %vm207_vm7 = vcmp.eq.f32.partialorder %v521_v4, 0.0 }
  0x57   :  { %v193_v48 = vsub.f32 %v192_v22, %v447_v18  ;;  %v196_v49 = vsub.f32 %v195_v25, %v467_v33  ;;  %v208_v60 = vand.u32 2147483648, %v521_v4  ;;  %vm232_vm8 = vcmp.eq.f32.partialorder %v523_v31, inf }
  0x58   :  { %v235_v55 = vand.u32 2147483648, %v523_v31  ;;  %v222_v1 = vsel %vm220_vm4, %v221_v41, %v219_v40  ;;  %vm234_vm9 = vcmp.eq.f32.partialorder %v523_v31, 0.0  ;;  %v167_v3 = vsel %vm166_vm1, %v498_v27, %v495_v17 }
  0x59   :  { %v280_v62 = vmul.f32 %v193_v48, %v193_v48  ;;  %v281_v63 = vmul.f32 %v196_v49, %v196_v49  ;;  %v186_v24 = vadd.f32 %v185_v52, %v175_v51  ;;  %v249_v29 = vsel %vm247_vm5, %v248_v45, %v246_v44 }
  0x5a   :  { %v265_v6 = vadd.f32 %v264_v58, %v257_v56  ;;  %v277_v19 = vsub.f32 %v274_v61, %v276_v53  ;;  %v271_v17 = vmul.f32 %v270_v59, %v270_v59 }
  0x5b   :  { %v336_v20 = vpop.eup %335  ;;  %v282_v27 = vadd.f32 %v281_v63, %v280_v62 }
  0x5c   :  { %v338_v9 = vpop.eup %337  ;;  %v199_v36 = vmul.f32 %v336_v20, %v521_v4  ;;  %v272_v11 = vadd.f32 %v271_v17, %v265_v6  ;;  %v278_v12 = vmul.f32 %v277_v19, %v277_v19 }
  0x5d   :  { %v226_v13 = vmul.f32 %v338_v9, %v523_v31 }
  0x5e   :  { %v200_v26 = vmul.f32 %v336_v20, %v199_v36  ;;  %v251_v36 = vsub.f32 %v186_v24, %v167_v3 }
  0x5f   :  { %v227_v30 = vmul.f32 %v338_v9, %v226_v13 }
  0x60   :  { %v201_v37 = vmul.f32 0.5, %v200_v26  ;;  %v288_v15 = vmul.f32 %v251_v36, %v251_v36 }
  0x61   :  { %v228_v43 = vmul.f32 0.5, %v227_v30 }
  0x62   :  { %v202_v50 = vsub.f32 1.5, %v201_v37 }
  0x63   :  { %v229_v54 = vsub.f32 1.5, %v228_v43 }
  0x64   :  { %v203_v57 = vmul.f32 %v336_v20, %v202_v50  ;;  %v188_v20 = vadd.f32 %v187_v0, %v176_v28 }
  0x65   :  { %v230_v18 = vmul.f32 %v338_v9, %v229_v54  ;;  %v189_v9 = vmul.f32 %v186_v24, %v186_v24 }
  0x66   :  { %v204_v33 = vmul.f32 %v203_v57, %v521_v4  ;;  %v294_v26 = vmul.f32 0.5, %v188_v20 }
  0x67   :  { %v231_v2 = vmul.f32 %v230_v18, %v523_v31  ;;  %v190_v13 = vsub.f32 %v188_v20, %v189_v9 }
  0x68   :  { %v206_v23 = vsel %vm205_vm6, %v521_v4, %v204_v33  ;;  %v295_v32 = vsel %vm72_vm10, %v294_v26, 0.0 }
  0x69   :  { %v209_v38 = vsel %vm207_vm7, %v208_v60, %v206_v23  ;;  %v233_v5 = vsel %vm232_vm8, %v523_v31, %v231_v2  ;;  %v279_v31 = vadd.f32 %v278_v12, %v272_v11  ;;  %v291_v25 = vmul.f32 0.5, %v190_v13 }
  0x6a   :  { %v223_v34 = vsub.f32 %v209_v38, %v222_v1  ;;  %v236_v7 = vsel %vm234_vm9, %v235_v55, %v233_v5 }
  0x6b   :  { %v250_v8 = vsub.f32 %v236_v7, %v249_v29 }
  0x6c   :  { %v283_v10 = vmul.f32 %v223_v34, %v223_v34 }
  0x6d   :  { %v285_v39 = vmul.f32 %v250_v8, %v250_v8 }
  0x6e   :  { %v284_v4 = vadd.f32 %v283_v10, %v282_v27 }
  0x70   :  { %v286_v14 = vadd.f32 %v285_v39, %v284_v4 }
  0x72   :  { %v287_v21 = vmul.f32 5.0, %v286_v14 }
  0x74   :  { %v289_v22 = vadd.f32 %v288_v15, %v287_v21 }
  0x76   :  { %v290_v30 = vadd.f32 %v289_v22, %v279_v31 }
  0x78   :  { %v292_v28 = vadd.f32 %v291_v25, %v290_v30 }
  0x7a   :  { %v293_v35 = vsel %vm71_vm11, %v292_v28, 0.0 }
  0x7b   :  { %v296_v37 = vadd.f32 %v295_v32, %v293_v35 }
  0x7d   :  { %298 = vst [vmem:[#allocation7] sm:$0xff] %v296_v37 }
  0x7e   :  { %309 = dma.vmem_to_hbm [thread:$0]  %s305_s1, 128, %s307_s23, [#allocation4]  }
  0x7f   :  { %415 = dma.done.wait [#allocation4], 128  }
  0x80   :  { %416 = vsyncadd [#allocation4], 4294967168 }
  0x81   :  { %314 = vsyncpa [#allocation3], 1 }
  0x82   :  { %315 = vsyncpa [#allocation6], 1 }
  0x83   :  { %316 = vsyncpa [#allocation4], 1 }

</bundles_post_ra>
